<compile_context>
chip_gen: v7x
topology: tpu7x:2x2x1
jax: 0.10.0
libtpu: 0.0.40
codegen_flags: <defaults>
</compile_context>

<pallas_src>
import functools
import math

import jax
import jax.numpy as jnp
from jax.experimental import pallas as pl
from jax.experimental.pallas import tpu as pltpu


def _mlp_kernel(x_ref, w1_ref, b1_ref, w2_ref, b2_ref, w3_ref, b3_ref, o_ref,
                *, layers_per_block):
    """Blocks: x [Lc,B,D], W* [Lc,in,out], b* [Lc,1,out], out [Lc,B,T]."""
    w_dtype = w1_ref.dtype  # bf16 on the fast path, f32 otherwise
    # Static unrolled loop over the layers in this block (tiny trip count);
    # all three matmuls hit the MXU with f32 accumulation, ReLU on the VPU.
    for l in range(layers_per_block):
        h = jnp.dot(x_ref[l], w1_ref[l], preferred_element_type=jnp.float32)
        h = jnp.maximum(h + b1_ref[l], 0.0)                       # [B,H] + [1,H]
        h = jnp.dot(h.astype(w_dtype), w2_ref[l],
                    preferred_element_type=jnp.float32)
        h = jnp.maximum(h + b2_ref[l], 0.0)
        h = jnp.dot(h.astype(w_dtype), w3_ref[l],
                    preferred_element_type=jnp.float32)
        h = jnp.maximum(h + b3_ref[l], 0.0)
        o_ref[l] = h.astype(o_ref.dtype)


def layerwise_alpha_predictor(x, w1, b1, w2, b2, w3, b3, *,
                              layers_per_step=None, use_bf16_matmul=False):
    """x: [L, B, D_in] -> [L, B, T].

    layers_per_step=None (default) collapses the grid to a single invocation.
    Set layers_per_step < L to keep a ("parallel",) grid over layer chunks
    (useful on v7x megacore when L grows).
    """
    L, B, D_in = x.shape
    H = w1.shape[-1]
    T = w3.shape[-1]
    out_dtype = x.dtype

    if layers_per_step is None:
        layers_per_step = L                     # fully collapsed: grid = (1,)
    assert L % layers_per_step == 0, "L must be divisible by layers_per_step"
    Lc = layers_per_step
    num_steps = L // Lc

    # Biases as [L, 1, H] / [L, 1, T]: the in-kernel broadcast against [B, H]
    # stays layout-trivial and avoids a 2D (1, H) block.
    b1r = b1.reshape(L, 1, H)
    b2r = b2.reshape(L, 1, H)
    b3r = b3.reshape(L, 1, T)

    if use_bf16_matmul:
        # v6e/v7x: bf16 MXU operands, f32 accumulation in-kernel. Casting in the
        # wrapper also halves the weight/activation DMA bytes into VMEM.
        x = x.astype(jnp.bfloat16)
        w1 = w1.astype(jnp.bfloat16)
        w2 = w2.astype(jnp.bfloat16)
        w3 = w3.astype(jnp.bfloat16)

    # TODO(synk): if H/B/D_in are ever scaled up (e.g. hidden_dim=2048+), tile the
    # H reduction dim of W2 with an extra grid axis and set
    # pltpu.CompilerParams(vmem_limit_bytes=...) — whole-matrix blocks only fit
    # because the problem is tiny (v7x has 64 MiB physical VMEM).
    grid_spec = pl.GridSpec(
        grid=(num_steps,),
        in_specs=[
            pl.BlockSpec((Lc, B, D_in), lambda i: (i, 0, 0)),   # x
            pl.BlockSpec((Lc, D_in, H), lambda i: (i, 0, 0)),   # W1
            pl.BlockSpec((Lc, 1, H),    lambda i: (i, 0, 0)),   # b1
            pl.BlockSpec((Lc, H, H),    lambda i: (i, 0, 0)),   # W2
            pl.BlockSpec((Lc, 1, H),    lambda i: (i, 0, 0)),   # b2
            pl.BlockSpec((Lc, H, T),    lambda i: (i, 0, 0)),   # W3
            pl.BlockSpec((Lc, 1, T),    lambda i: (i, 0, 0)),   # b3
        ],
        out_specs=pl.BlockSpec((Lc, B, T), lambda i: (i, 0, 0)),
    )

    kernel = functools.partial(_mlp_kernel, layers_per_block=Lc)

    return pl.pallas_call(
        kernel,
        out_shape=jax.ShapeDtypeStruct((L, B, T), out_dtype),
        grid_spec=grid_spec,
        compiler_params=pltpu.CompilerParams(
            dimension_semantics=("parallel",)),   # layer chunks split across TCs
    )(x, w1, b1r, w2, b2r, w3, b3r)


def _xavier_uniform(key, shape, dtype=jnp.float32):
    # shape = (..., fan_in, fan_out) for the x @ W convention used here.
    fan_in, fan_out = shape[-2], shape[-1]
    bound = math.sqrt(6.0 / (fan_in + fan_out))
    return jax.random.uniform(key, shape, dtype, minval=-bound, maxval=bound)


def init_params(key, num_layers, input_dim, hidden_dim, num_tasks):
    """Per-layer Xavier-uniform weights, zero biases (stacked over L)."""
    k1, k2, k3 = jax.random.split(key, 3)
    w1 = _xavier_uniform(k1, (num_layers, input_dim, hidden_dim))
    w2 = _xavier_uniform(k2, (num_layers, hidden_dim, hidden_dim))
    w3 = _xavier_uniform(k3, (num_layers, hidden_dim, num_tasks))
    b1 = jnp.zeros((num_layers, hidden_dim), jnp.float32)
    b2 = jnp.zeros((num_layers, hidden_dim), jnp.float32)
    b3 = jnp.zeros((num_layers, num_tasks), jnp.float32)
    return w1, b1, w2, b2, w3, b3


def _reference(x, w1, b1, w2, b2, w3, b3):
    # Pure-JAX f32 reference (same math as the PyTorch forward).
    h = jax.nn.relu(jnp.einsum("lbd,ldh->lbh", x, w1) + b1[:, None, :])
    h = jax.nn.relu(jnp.einsum("lbh,lhk->lbk", h, w2) + b2[:, None, :])
    h = jax.nn.relu(jnp.einsum("lbh,lht->lbt", h, w3) + b3[:, None, :])
    return h


if __name__ == "__main__":
    # Small shapes consistent with StatsMerging: 6 layer-statistics features in,
    # a few layers, a handful of additional tasks out.
    num_layers = 4
    batch = 8
    input_dim = 6
    hidden_dim = 32
    num_additional_tasks = 8

    key = jax.random.PRNGKey(0)
    kx, kp = jax.random.split(key)
    x = jax.random.normal(kx, (num_layers, batch, input_dim), jnp.float32)
    params = init_params(kp, num_layers, input_dim, hidden_dim,
                         num_additional_tasks)

    ref = _reference(x, *params)

    # Default path: single grid step, f32 MXU (exact match to PyTorch forward).
    out = jax.block_until_ready(layerwise_alpha_predictor(x, *params))
    assert out.shape == (num_layers, batch, num_additional_tasks)
    assert jnp.allclose(out, ref, atol=1e-5, rtol=1e-5)

    # Chunked-grid path (v7x megacore style): 2 layers per step, grid=(2,).
    out_chunked = jax.block_until_ready(
        layerwise_alpha_predictor(x, *params, layers_per_step=2))
    assert jnp.allclose(out_chunked, ref, atol=1e-5, rtol=1e-5)

    # bf16-MXU path (v6e/v7x recommendation): f32 accumulation, loose tolerance.
    out_bf16 = jax.block_until_ready(
        layerwise_alpha_predictor(x, *params, use_bf16_matmul=True))
    assert jnp.allclose(out_bf16, ref, atol=5e-2, rtol=5e-2)

    print("KERNEL_OK")
</pallas_src>

<mosaic_0001>
module attributes {stable_mosaic.version = 11 : i64} {
  func.func @_mlp_kernel(%arg0: i32, %arg1: memref<4x8x6xf32, #tpu.memory_space<vmem>>, %arg2: memref<4x6x32xf32, #tpu.memory_space<vmem>>, %arg3: memref<4x1x32xf32, #tpu.memory_space<vmem>>, %arg4: memref<4x32x32xf32, #tpu.memory_space<vmem>>, %arg5: memref<4x1x32xf32, #tpu.memory_space<vmem>>, %arg6: memref<4x32x8xf32, #tpu.memory_space<vmem>>, %arg7: memref<4x1x8xf32, #tpu.memory_space<vmem>>, %arg8: memref<4x8x8xf32, #tpu.memory_space<vmem>>) attributes {dimension_semantics = [#tpu.dimension_semantics<parallel>], iteration_bounds = array<i64: 1>, scalar_prefetch = 0 : i64, scratch_operands = 0 : i64, tpu.core_type = #tpu.core_type<tc>, window_params = [{transform_indices = @transform_0, window_bounds = array<i64: 4, 8, 6>}, {transform_indices = @transform_1, window_bounds = array<i64: 4, 6, 32>}, {transform_indices = @transform_2, window_bounds = array<i64: 4, 1, 32>}, {transform_indices = @transform_3, window_bounds = array<i64: 4, 32, 32>}, {transform_indices = @transform_4, window_bounds = array<i64: 4, 1, 32>}, {transform_indices = @transform_5, window_bounds = array<i64: 4, 32, 8>}, {transform_indices = @transform_6, window_bounds = array<i64: 4, 1, 8>}, {transform_indices = @transform_7, window_bounds = array<i64: 4, 8, 8>}]} {
    %c0 = arith.constant 0 : index
    %c0_0 = arith.constant 0 : index
    %c0_1 = arith.constant 0 : index
    %0 = vector.load %arg1[%c0, %c0_0, %c0_1] : memref<4x8x6xf32, #tpu.memory_space<vmem>>, vector<1x8x6xf32>
    %1 = vector.shape_cast %0 : vector<1x8x6xf32> to vector<8x6xf32>
    %c0_2 = arith.constant 0 : index
    %c0_3 = arith.constant 0 : index
    %c0_4 = arith.constant 0 : index
    %2 = vector.load %arg2[%c0_2, %c0_3, %c0_4] : memref<4x6x32xf32, #tpu.memory_space<vmem>>, vector<1x6x32xf32>
    %3 = vector.shape_cast %2 : vector<1x6x32xf32> to vector<6x32xf32>
    %cst = arith.constant dense<0.000000e+00> : vector<8x32xf32>
    %4 = tpu.matmul %1, %3, %cst {dimension_numbers = #tpu.dot_dimension_numbers<[1], [0], [0], [1], [0, 0, 1, 1], [], []>} : vector<8x6xf32>, vector<6x32xf32>, vector<8x32xf32> -> vector<8x32xf32>
    %c0_5 = arith.constant 0 : index
    %c0_6 = arith.constant 0 : index
    %c0_7 = arith.constant 0 : index
    %5 = vector.load %arg3[%c0_5, %c0_6, %c0_7] : memref<4x1x32xf32, #tpu.memory_space<vmem>>, vector<1x1x32xf32>
    %6 = vector.shape_cast %5 : vector<1x1x32xf32> to vector<1x32xf32>
    %7 = vector.broadcast %6 : vector<1x32xf32> to vector<8x32xf32>
    %8 = arith.addf %4, %7 : vector<8x32xf32>
    %cst_8 = arith.constant 0.000000e+00 : f32
    %9 = vector.broadcast %cst_8 : f32 to vector<8x32xf32>
    %10 = arith.maximumf %8, %9 : vector<8x32xf32>
    %c0_9 = arith.constant 0 : index
    %c0_10 = arith.constant 0 : index
    %c0_11 = arith.constant 0 : index
    %11 = vector.load %arg4[%c0_9, %c0_10, %c0_11] : memref<4x32x32xf32, #tpu.memory_space<vmem>>, vector<1x32x32xf32>
    %12 = vector.shape_cast %11 : vector<1x32x32xf32> to vector<32x32xf32>
    %cst_12 = arith.constant dense<0.000000e+00> : vector<8x32xf32>
    %13 = tpu.matmul %10, %12, %cst_12 {dimension_numbers = #tpu.dot_dimension_numbers<[1], [0], [0], [1], [0, 0, 1, 1], [], []>} : vector<8x32xf32>, vector<32x32xf32>, vector<8x32xf32> -> vector<8x32xf32>
    %c0_13 = arith.constant 0 : index
    %c0_14 = arith.constant 0 : index
    %c0_15 = arith.constant 0 : index
    %14 = vector.load %arg5[%c0_13, %c0_14, %c0_15] : memref<4x1x32xf32, #tpu.memory_space<vmem>>, vector<1x1x32xf32>
    %15 = vector.shape_cast %14 : vector<1x1x32xf32> to vector<1x32xf32>
    %16 = vector.broadcast %15 : vector<1x32xf32> to vector<8x32xf32>
    %17 = arith.addf %13, %16 : vector<8x32xf32>
    %cst_16 = arith.constant 0.000000e+00 : f32
    %18 = vector.broadcast %cst_16 : f32 to vector<8x32xf32>
    %19 = arith.maximumf %17, %18 : vector<8x32xf32>
    %c0_17 = arith.constant 0 : index
    %c0_18 = arith.constant 0 : index
    %c0_19 = arith.constant 0 : index
    %20 = vector.load %arg6[%c0_17, %c0_18, %c0_19] : memref<4x32x8xf32, #tpu.memory_space<vmem>>, vector<1x32x8xf32>
    %21 = vector.shape_cast %20 : vector<1x32x8xf32> to vector<32x8xf32>
    %cst_20 = arith.constant dense<0.000000e+00> : vector<8x8xf32>
    %22 = tpu.matmul %19, %21, %cst_20 {dimension_numbers = #tpu.dot_dimension_numbers<[1], [0], [0], [1], [0, 0, 1, 1], [], []>} : vector<8x32xf32>, vector<32x8xf32>, vector<8x8xf32> -> vector<8x8xf32>
    %c0_21 = arith.constant 0 : index
    %c0_22 = arith.constant 0 : index
    %c0_23 = arith.constant 0 : index
    %23 = vector.load %arg7[%c0_21, %c0_22, %c0_23] : memref<4x1x8xf32, #tpu.memory_space<vmem>>, vector<1x1x8xf32>
    %24 = vector.shape_cast %23 : vector<1x1x8xf32> to vector<1x8xf32>
    %25 = vector.broadcast %24 : vector<1x8xf32> to vector<8x8xf32>
    %26 = arith.addf %22, %25 : vector<8x8xf32>
    %cst_24 = arith.constant 0.000000e+00 : f32
    %27 = vector.broadcast %cst_24 : f32 to vector<8x8xf32>
    %28 = arith.maximumf %26, %27 : vector<8x8xf32>
    %c0_25 = arith.constant 0 : index
    %c0_26 = arith.constant 0 : index
    %c0_27 = arith.constant 0 : index
    %29 = vector.load %arg8[%c0_25, %c0_26, %c0_27] : memref<4x8x8xf32, #tpu.memory_space<vmem>>, vector<1x8x8xf32>
    %30 = vector.shape_cast %29 : vector<1x8x8xf32> to vector<8x8xf32>
    %31 = vector.shape_cast %28 : vector<8x8xf32> to vector<1x8x8xf32>
    tpu.vector_store %arg8[%c0_25, %c0_26, %c0_27], %31 {strides = array<i32>} : memref<4x8x8xf32, #tpu.memory_space<vmem>>, vector<1x8x8xf32>,
    %c1 = arith.constant 1 : index
    %c0_28 = arith.constant 0 : index
    %c0_29 = arith.constant 0 : index
    %32 = vector.load %arg1[%c1, %c0_28, %c0_29] : memref<4x8x6xf32, #tpu.memory_space<vmem>>, vector<1x8x6xf32>
    %33 = vector.shape_cast %32 : vector<1x8x6xf32> to vector<8x6xf32>
    %c1_30 = arith.constant 1 : index
    %c0_31 = arith.constant 0 : index
    %c0_32 = arith.constant 0 : index
    %34 = vector.load %arg2[%c1_30, %c0_31, %c0_32] : memref<4x6x32xf32, #tpu.memory_space<vmem>>, vector<1x6x32xf32>
    %35 = vector.shape_cast %34 : vector<1x6x32xf32> to vector<6x32xf32>
    %cst_33 = arith.constant dense<0.000000e+00> : vector<8x32xf32>
    %36 = tpu.matmul %33, %35, %cst_33 {dimension_numbers = #tpu.dot_dimension_numbers<[1], [0], [0], [1], [0, 0, 1, 1], [], []>} : vector<8x6xf32>, vector<6x32xf32>, vector<8x32xf32> -> vector<8x32xf32>
    %c1_34 = arith.constant 1 : index
    %c0_35 = arith.constant 0 : index
    %c0_36 = arith.constant 0 : index
    %37 = vector.load %arg3[%c1_34, %c0_35, %c0_36] : memref<4x1x32xf32, #tpu.memory_space<vmem>>, vector<1x1x32xf32>
    %38 = vector.shape_cast %37 : vector<1x1x32xf32> to vector<1x32xf32>
    %39 = vector.broadcast %38 : vector<1x32xf32> to vector<8x32xf32>
    %40 = arith.addf %36, %39 : vector<8x32xf32>
    %cst_37 = arith.constant 0.000000e+00 : f32
    %41 = vector.broadcast %cst_37 : f32 to vector<8x32xf32>
    %42 = arith.maximumf %40, %41 : vector<8x32xf32>
    %c1_38 = arith.constant 1 : index
    %c0_39 = arith.constant 0 : index
    %c0_40 = arith.constant 0 : index
    %43 = vector.load %arg4[%c1_38, %c0_39, %c0_40] : memref<4x32x32xf32, #tpu.memory_space<vmem>>, vector<1x32x32xf32>
    %44 = vector.shape_cast %43 : vector<1x32x32xf32> to vector<32x32xf32>
    %cst_41 = arith.constant dense<0.000000e+00> : vector<8x32xf32>
    %45 = tpu.matmul %42, %44, %cst_41 {dimension_numbers = #tpu.dot_dimension_numbers<[1], [0], [0], [1], [0, 0, 1, 1], [], []>} : vector<8x32xf32>, vector<32x32xf32>, vector<8x32xf32> -> vector<8x32xf32>
    %c1_42 = arith.constant 1 : index
    %c0_43 = arith.constant 0 : index
    %c0_44 = arith.constant 0 : index
    %46 = vector.load %arg5[%c1_42, %c0_43, %c0_44] : memref<4x1x32xf32, #tpu.memory_space<vmem>>, vector<1x1x32xf32>
    %47 = vector.shape_cast %46 : vector<1x1x32xf32> to vector<1x32xf32>
    %48 = vector.broadcast %47 : vector<1x32xf32> to vector<8x32xf32>
    %49 = arith.addf %45, %48 : vector<8x32xf32>
    %cst_45 = arith.constant 0.000000e+00 : f32
    %50 = vector.broadcast %cst_45 : f32 to vector<8x32xf32>
    %51 = arith.maximumf %49, %50 : vector<8x32xf32>
    %c1_46 = arith.constant 1 : index
    %c0_47 = arith.constant 0 : index
    %c0_48 = arith.constant 0 : index
    %52 = vector.load %arg6[%c1_46, %c0_47, %c0_48] : memref<4x32x8xf32, #tpu.memory_space<vmem>>, vector<1x32x8xf32>
    %53 = vector.shape_cast %52 : vector<1x32x8xf32> to vector<32x8xf32>
    %cst_49 = arith.constant dense<0.000000e+00> : vector<8x8xf32>
    %54 = tpu.matmul %51, %53, %cst_49 {dimension_numbers = #tpu.dot_dimension_numbers<[1], [0], [0], [1], [0, 0, 1, 1], [], []>} : vector<8x32xf32>, vector<32x8xf32>, vector<8x8xf32> -> vector<8x8xf32>
    %c1_50 = arith.constant 1 : index
    %c0_51 = arith.constant 0 : index
    %c0_52 = arith.constant 0 : index
    %55 = vector.load %arg7[%c1_50, %c0_51, %c0_52] : memref<4x1x8xf32, #tpu.memory_space<vmem>>, vector<1x1x8xf32>
    %56 = vector.shape_cast %55 : vector<1x1x8xf32> to vector<1x8xf32>
    %57 = vector.broadcast %56 : vector<1x8xf32> to vector<8x8xf32>
    %58 = arith.addf %54, %57 : vector<8x8xf32>
    %cst_53 = arith.constant 0.000000e+00 : f32
    %59 = vector.broadcast %cst_53 : f32 to vector<8x8xf32>
    %60 = arith.maximumf %58, %59 : vector<8x8xf32>
    %c1_54 = arith.constant 1 : index
    %c0_55 = arith.constant 0 : index
    %c0_56 = arith.constant 0 : index
    %61 = vector.load %arg8[%c1_54, %c0_55, %c0_56] : memref<4x8x8xf32, #tpu.memory_space<vmem>>, vector<1x8x8xf32>
    %62 = vector.shape_cast %61 : vector<1x8x8xf32> to vector<8x8xf32>
    %63 = vector.shape_cast %60 : vector<8x8xf32> to vector<1x8x8xf32>
    tpu.vector_store %arg8[%c1_54, %c0_55, %c0_56], %63 {strides = array<i32>} : memref<4x8x8xf32, #tpu.memory_space<vmem>>, vector<1x8x8xf32>,
    %c2 = arith.constant 2 : index
    %c0_57 = arith.constant 0 : index
    %c0_58 = arith.constant 0 : index
    %64 = vector.load %arg1[%c2, %c0_57, %c0_58] : memref<4x8x6xf32, #tpu.memory_space<vmem>>, vector<1x8x6xf32>
    %65 = vector.shape_cast %64 : vector<1x8x6xf32> to vector<8x6xf32>
    %c2_59 = arith.constant 2 : index
    %c0_60 = arith.constant 0 : index
    %c0_61 = arith.constant 0 : index
    %66 = vector.load %arg2[%c2_59, %c0_60, %c0_61] : memref<4x6x32xf32, #tpu.memory_space<vmem>>, vector<1x6x32xf32>
    %67 = vector.shape_cast %66 : vector<1x6x32xf32> to vector<6x32xf32>
    %cst_62 = arith.constant dense<0.000000e+00> : vector<8x32xf32>
    %68 = tpu.matmul %65, %67, %cst_62 {dimension_numbers = #tpu.dot_dimension_numbers<[1], [0], [0], [1], [0, 0, 1, 1], [], []>} : vector<8x6xf32>, vector<6x32xf32>, vector<8x32xf32> -> vector<8x32xf32>
    %c2_63 = arith.constant 2 : index
    %c0_64 = arith.constant 0 : index
    %c0_65 = arith.constant 0 : index
    %69 = vector.load %arg3[%c2_63, %c0_64, %c0_65] : memref<4x1x32xf32, #tpu.memory_space<vmem>>, vector<1x1x32xf32>
    %70 = vector.shape_cast %69 : vector<1x1x32xf32> to vector<1x32xf32>
    %71 = vector.broadcast %70 : vector<1x32xf32> to vector<8x32xf32>
    %72 = arith.addf %68, %71 : vector<8x32xf32>
    %cst_66 = arith.constant 0.000000e+00 : f32
    %73 = vector.broadcast %cst_66 : f32 to vector<8x32xf32>
    %74 = arith.maximumf %72, %73 : vector<8x32xf32>
    %c2_67 = arith.constant 2 : index
    %c0_68 = arith.constant 0 : index
    %c0_69 = arith.constant 0 : index
    %75 = vector.load %arg4[%c2_67, %c0_68, %c0_69] : memref<4x32x32xf32, #tpu.memory_space<vmem>>, vector<1x32x32xf32>
    %76 = vector.shape_cast %75 : vector<1x32x32xf32> to vector<32x32xf32>
    %cst_70 = arith.constant dense<0.000000e+00> : vector<8x32xf32>
    %77 = tpu.matmul %74, %76, %cst_70 {dimension_numbers = #tpu.dot_dimension_numbers<[1], [0], [0], [1], [0, 0, 1, 1], [], []>} : vector<8x32xf32>, vector<32x32xf32>, vector<8x32xf32> -> vector<8x32xf32>
    %c2_71 = arith.constant 2 : index
    %c0_72 = arith.constant 0 : index
    %c0_73 = arith.constant 0 : index
    %78 = vector.load %arg5[%c2_71, %c0_72, %c0_73] : memref<4x1x32xf32, #tpu.memory_space<vmem>>, vector<1x1x32xf32>
    %79 = vector.shape_cast %78 : vector<1x1x32xf32> to vector<1x32xf32>
    %80 = vector.broadcast %79 : vector<1x32xf32> to vector<8x32xf32>
    %81 = arith.addf %77, %80 : vector<8x32xf32>
    %cst_74 = arith.constant 0.000000e+00 : f32
    %82 = vector.broadcast %cst_74 : f32 to vector<8x32xf32>
    %83 = arith.maximumf %81, %82 : vector<8x32xf32>
    %c2_75 = arith.constant 2 : index
    %c0_76 = arith.constant 0 : index
    %c0_77 = arith.constant 0 : index
    %84 = vector.load %arg6[%c2_75, %c0_76, %c0_77] : memref<4x32x8xf32, #tpu.memory_space<vmem>>, vector<1x32x8xf32>
    %85 = vector.shape_cast %84 : vector<1x32x8xf32> to vector<32x8xf32>
    %cst_78 = arith.constant dense<0.000000e+00> : vector<8x8xf32>
    %86 = tpu.matmul %83, %85, %cst_78 {dimension_numbers = #tpu.dot_dimension_numbers<[1], [0], [0], [1], [0, 0, 1, 1], [], []>} : vector<8x32xf32>, vector<32x8xf32>, vector<8x8xf32> -> vector<8x8xf32>
    %c2_79 = arith.constant 2 : index
    %c0_80 = arith.constant 0 : index
    %c0_81 = arith.constant 0 : index
    %87 = vector.load %arg7[%c2_79, %c0_80, %c0_81] : memref<4x1x8xf32, #tpu.memory_space<vmem>>, vector<1x1x8xf32>
    %88 = vector.shape_cast %87 : vector<1x1x8xf32> to vector<1x8xf32>
    %89 = vector.broadcast %88 : vector<1x8xf32> to vector<8x8xf32>
    %90 = arith.addf %86, %89 : vector<8x8xf32>
    %cst_82 = arith.constant 0.000000e+00 : f32
    %91 = vector.broadcast %cst_82 : f32 to vector<8x8xf32>
    %92 = arith.maximumf %90, %91 : vector<8x8xf32>
    %c2_83 = arith.constant 2 : index
    %c0_84 = arith.constant 0 : index
    %c0_85 = arith.constant 0 : index
    %93 = vector.load %arg8[%c2_83, %c0_84, %c0_85] : memref<4x8x8xf32, #tpu.memory_space<vmem>>, vector<1x8x8xf32>
    %94 = vector.shape_cast %93 : vector<1x8x8xf32> to vector<8x8xf32>
    %95 = vector.shape_cast %92 : vector<8x8xf32> to vector<1x8x8xf32>
    tpu.vector_store %arg8[%c2_83, %c0_84, %c0_85], %95 {strides = array<i32>} : memref<4x8x8xf32, #tpu.memory_space<vmem>>, vector<1x8x8xf32>,
    %c3 = arith.constant 3 : index
    %c0_86 = arith.constant 0 : index
    %c0_87 = arith.constant 0 : index
    %96 = vector.load %arg1[%c3, %c0_86, %c0_87] : memref<4x8x6xf32, #tpu.memory_space<vmem>>, vector<1x8x6xf32>
    %97 = vector.shape_cast %96 : vector<1x8x6xf32> to vector<8x6xf32>
    %c3_88 = arith.constant 3 : index
    %c0_89 = arith.constant 0 : index
    %c0_90 = arith.constant 0 : index
    %98 = vector.load %arg2[%c3_88, %c0_89, %c0_90] : memref<4x6x32xf32, #tpu.memory_space<vmem>>, vector<1x6x32xf32>
    %99 = vector.shape_cast %98 : vector<1x6x32xf32> to vector<6x32xf32>
    %cst_91 = arith.constant dense<0.000000e+00> : vector<8x32xf32>
    %100 = tpu.matmul %97, %99, %cst_91 {dimension_numbers = #tpu.dot_dimension_numbers<[1], [0], [0], [1], [0, 0, 1, 1], [], []>} : vector<8x6xf32>, vector<6x32xf32>, vector<8x32xf32> -> vector<8x32xf32>
    %c3_92 = arith.constant 3 : index
    %c0_93 = arith.constant 0 : index
    %c0_94 = arith.constant 0 : index
    %101 = vector.load %arg3[%c3_92, %c0_93, %c0_94] : memref<4x1x32xf32, #tpu.memory_space<vmem>>, vector<1x1x32xf32>
    %102 = vector.shape_cast %101 : vector<1x1x32xf32> to vector<1x32xf32>
    %103 = vector.broadcast %102 : vector<1x32xf32> to vector<8x32xf32>
    %104 = arith.addf %100, %103 : vector<8x32xf32>
    %cst_95 = arith.constant 0.000000e+00 : f32
    %105 = vector.broadcast %cst_95 : f32 to vector<8x32xf32>
    %106 = arith.maximumf %104, %105 : vector<8x32xf32>
    %c3_96 = arith.constant 3 : index
    %c0_97 = arith.constant 0 : index
    %c0_98 = arith.constant 0 : index
    %107 = vector.load %arg4[%c3_96, %c0_97, %c0_98] : memref<4x32x32xf32, #tpu.memory_space<vmem>>, vector<1x32x32xf32>
    %108 = vector.shape_cast %107 : vector<1x32x32xf32> to vector<32x32xf32>
    %cst_99 = arith.constant dense<0.000000e+00> : vector<8x32xf32>
    %109 = tpu.matmul %106, %108, %cst_99 {dimension_numbers = #tpu.dot_dimension_numbers<[1], [0], [0], [1], [0, 0, 1, 1], [], []>} : vector<8x32xf32>, vector<32x32xf32>, vector<8x32xf32> -> vector<8x32xf32>
    %c3_100 = arith.constant 3 : index
    %c0_101 = arith.constant 0 : index
    %c0_102 = arith.constant 0 : index
    %110 = vector.load %arg5[%c3_100, %c0_101, %c0_102] : memref<4x1x32xf32, #tpu.memory_space<vmem>>, vector<1x1x32xf32>
    %111 = vector.shape_cast %110 : vector<1x1x32xf32> to vector<1x32xf32>
    %112 = vector.broadcast %111 : vector<1x32xf32> to vector<8x32xf32>
    %113 = arith.addf %109, %112 : vector<8x32xf32>
    %cst_103 = arith.constant 0.000000e+00 : f32
    %114 = vector.broadcast %cst_103 : f32 to vector<8x32xf32>
    %115 = arith.maximumf %113, %114 : vector<8x32xf32>
    %c3_104 = arith.constant 3 : index
    %c0_105 = arith.constant 0 : index
    %c0_106 = arith.constant 0 : index
    %116 = vector.load %arg6[%c3_104, %c0_105, %c0_106] : memref<4x32x8xf32, #tpu.memory_space<vmem>>, vector<1x32x8xf32>
    %117 = vector.shape_cast %116 : vector<1x32x8xf32> to vector<32x8xf32>
    %cst_107 = arith.constant dense<0.000000e+00> : vector<8x8xf32>
    %118 = tpu.matmul %115, %117, %cst_107 {dimension_numbers = #tpu.dot_dimension_numbers<[1], [0], [0], [1], [0, 0, 1, 1], [], []>} : vector<8x32xf32>, vector<32x8xf32>, vector<8x8xf32> -> vector<8x8xf32>
    %c3_108 = arith.constant 3 : index
    %c0_109 = arith.constant 0 : index
    %c0_110 = arith.constant 0 : index
    %119 = vector.load %arg7[%c3_108, %c0_109, %c0_110] : memref<4x1x8xf32, #tpu.memory_space<vmem>>, vector<1x1x8xf32>
    %120 = vector.shape_cast %119 : vector<1x1x8xf32> to vector<1x8xf32>
    %121 = vector.broadcast %120 : vector<1x8xf32> to vector<8x8xf32>
    %122 = arith.addf %118, %121 : vector<8x8xf32>
    %cst_111 = arith.constant 0.000000e+00 : f32
    %123 = vector.broadcast %cst_111 : f32 to vector<8x8xf32>
    %124 = arith.maximumf %122, %123 : vector<8x8xf32>
    %c3_112 = arith.constant 3 : index
    %c0_113 = arith.constant 0 : index
    %c0_114 = arith.constant 0 : index
    %125 = vector.load %arg8[%c3_112, %c0_113, %c0_114] : memref<4x8x8xf32, #tpu.memory_space<vmem>>, vector<1x8x8xf32>
    %126 = vector.shape_cast %125 : vector<1x8x8xf32> to vector<8x8xf32>
    %127 = vector.shape_cast %124 : vector<8x8xf32> to vector<1x8x8xf32>
    tpu.vector_store %arg8[%c3_112, %c0_113, %c0_114], %127 {strides = array<i32>} : memref<4x8x8xf32, #tpu.memory_space<vmem>>, vector<1x8x8xf32>,
    return
  }
  func.func @transform_0(%arg0: i32) -> (i32, i32, i32) {
    %c0_i32 = arith.constant 0 : i32
    %c0_i32_0 = arith.constant 0 : i32
    %c0_i32_1 = arith.constant 0 : i32
    return %arg0, %c0_i32, %c0_i32_0 : i32, i32, i32
  }
  func.func @transform_1(%arg0: i32) -> (i32, i32, i32) {
    %c0_i32 = arith.constant 0 : i32
    %c0_i32_0 = arith.constant 0 : i32
    %c0_i32_1 = arith.constant 0 : i32
    return %arg0, %c0_i32, %c0_i32_0 : i32, i32, i32
  }
  func.func @transform_2(%arg0: i32) -> (i32, i32, i32) {
    %c0_i32 = arith.constant 0 : i32
    %c0_i32_0 = arith.constant 0 : i32
    %c0_i32_1 = arith.constant 0 : i32
    return %arg0, %c0_i32, %c0_i32_0 : i32, i32, i32
  }
  func.func @transform_3(%arg0: i32) -> (i32, i32, i32) {
    %c0_i32 = arith.constant 0 : i32
    %c0_i32_0 = arith.constant 0 : i32
    %c0_i32_1 = arith.constant 0 : i32
    return %arg0, %c0_i32, %c0_i32_0 : i32, i32, i32
  }
  func.func @transform_4(%arg0: i32) -> (i32, i32, i32) {
    %c0_i32 = arith.constant 0 : i32
    %c0_i32_0 = arith.constant 0 : i32
    %c0_i32_1 = arith.constant 0 : i32
    return %arg0, %c0_i32, %c0_i32_0 : i32, i32, i32
  }
  func.func @transform_5(%arg0: i32) -> (i32, i32, i32) {
    %c0_i32 = arith.constant 0 : i32
    %c0_i32_0 = arith.constant 0 : i32
    %c0_i32_1 = arith.constant 0 : i32
    return %arg0, %c0_i32, %c0_i32_0 : i32, i32, i32
  }
  func.func @transform_6(%arg0: i32) -> (i32, i32, i32) {
    %c0_i32 = arith.constant 0 : i32
    %c0_i32_0 = arith.constant 0 : i32
    %c0_i32_1 = arith.constant 0 : i32
    return %arg0, %c0_i32, %c0_i32_0 : i32, i32, i32
  }
  func.func @transform_7(%arg0: i32) -> (i32, i32, i32) {
    %c0_i32 = arith.constant 0 : i32
    %c0_i32_0 = arith.constant 0 : i32
    %c0_i32_1 = arith.constant 0 : i32
    return %arg0, %c0_i32, %c0_i32_0 : i32, i32, i32
  }
}

</mosaic_0001>

<bundles_post_ra>
// kernel: tpu_custom_call.1
= control target key start
LH: loop header
LB: loop body
LE: loop exit
PB: predicated region body
PF: predicated region fallthrough
CT: control target
= control target key end

     0   :  { %vm40_vm0 = vcmask 1045504   ;;  %v1400_v2 = vmov 0.0   ;;  %vm1401_vm1 = vmmov 0   ;;  %vm36_vm2 = vcmask 48128   ;;  %s1678_s0 = inlined_call_operand.vmem [shape: f32[4,8,6], index: 0, kind: input, shape index: {}]   ;;  %s1679_s1 = inlined_call_operand.vmem [shape: f32[4,6,32], index: 1, kind: input, shape index: {}]   ;;  %s1680_s2 = inlined_call_operand.vmem [shape: f32[4,1,32], index: 2, kind: input, shape index: {}]   ;;  %s1681_s3 = inlined_call_operand.vmem [shape: f32[4,32,32], index: 3, kind: input, shape index: {}]   ;;  %s1682_s4 = inlined_call_operand.vmem [shape: f32[4,1,32], index: 4, kind: input, shape index: {}]   ;;  %s1683_s5 = inlined_call_operand.vmem [shape: f32[4,32,8], index: 5, kind: input, shape index: {}]   ;;  %s1684_s6 = inlined_call_operand.vmem [shape: f32[4,1,8], index: 6, kind: input, shape index: {}]   ;;  %s1685_s7 = inlined_call_operand.hbm [shape: f32[4,8,8], index: 7, kind: output, shape index: {}]  }
   0x1   :  { %v28_v0 = vld [vmem:[%s1679_s1] sm:$0x3f]  ;;  %1214 = vmatprep.subr.mxu0 %v1400_v2  ;;  %1216 = vmatprep.mubr.msk.f32.mxu0 %vm1401_vm1, %v1400_v2  ;;  %v116_v4 = vld [vmem:[%s1681_s3 + $0x8] sm:$0xff]  ;;  %v1402_v5 = vmov 0.0|0.0  }
   0x2   :  { %v27_v1 = vld [vmem:[%s1678_s0] sm:$0xff]  ;;  %1215 = vmatpush3.msk.msra.mxu0 %vm40_vm0, %v28_v0  ;;  %1322 = vmatprep.subr.bf16.mxu1 %v1402_v5 }
   0x3   :  { %v115_v3 = vld [vmem:[%s1681_s3] sm:$0xff] }
   0x4   :  { %v1323_v6 = vpack.c.bf16 %v116_v4, %v115_v3 }
   0x5   :  { %12 = vsyncpa [#allocation3], 0  ;;  %1217 = vmatmul.mubr.msk.f32.vlgmr.msra.gmra.mrb[0].mxu0 %vm36_vm2, %v27_v1  ;;  %1227 = vmatprep.mubr.msk.f32.mxu1 %vm1401_vm1, %v1400_v2  ;;  %v117_v7 = vld [vmem:[%s1681_s3 + $0x10] sm:$0xff]  ;;  %v118_v8 = vld [vmem:[%s1681_s3 + $0x18] sm:$0xff]  ;;  %vm126_vm3 = vcmask 261120   ;;  %vm286_vm4 = vcmask 64512  }
   0x6   :  { %1324 = vmatpush3.bf16.msra.mxu1 %v1323_v6  ;;  %1328 = vmatprep.subr.bf16.mxu0 %v1402_v5  ;;  %v1326_v9 = vpack.c.bf16 %v118_v8, %v117_v7  ;;  %v201_v10 = vld [vmem:[%s1683_s5] sm:$0xff]  ;;  %v202_v11 = vld [vmem:[%s1683_s5 + $0x8] sm:$0xff]  ;;  %v203_v20 = vld [vmem:[%s1683_s5 + $0x10] sm:$0xff]  ;;  %s1403_s29 = smov [#allocation2]  }
   0x7   :  { %1325 = vmatprep.subr.bf16.mxu1 %v1402_v5  ;;  %1238 = vmatprep.mubr.msk.f32.mxu0 %vm1401_vm1, %v1400_v2  ;;  %v1329_v12 = vpack.c.bf16 %v202_v11, %v201_v10  ;;  %v1099_v13 = vld [vmem:[%s1680_s2] ss:$0 sm:$0xff]  ;;  %v1107_v18 = vld [vmem:[%s1679_s1 + $0x8] sm:$0x3f]  ;;  %v204_v21 = vld [vmem:[%s1683_s5 + $0x18] sm:$0xff]  ;;  %s1088_s30 = sshll.u32 %s1403_s29, 4  ;;  %s1089_s30 = int_to_ptr.vmem [resolvable:$true] %s1088_s30 }
   0x8   :  { %v1106_v19 = vld [vmem:[%s1678_s0 + $0x8] sm:$0xff]  ;;  %v1332_v22 = vpack.c.bf16 %v204_v21, %v203_v20  ;;  %v1102_v23 = vld [vmem:[%s1682_s4] ss:$0 sm:$0xff]  ;;  %v1109_v30 = vld [vmem:[%s1680_s2 + $0x1] ss:$0 sm:$0xff]  ;;  %p1381_p1 = scmp.lt.s32.totalorder %s1089_s30, %s1089_s30 }
   0x9   :  { %1330 = vmatpush3.bf16.msra.mxu0 %v1329_v12  ;;  %v1112_v24 = vld [vmem:[%s1681_s3 + $0x20] sm:$0xff]  ;;  %v1113_v25 = vld [vmem:[%s1681_s3 + $0x28] sm:$0xff]  ;;  %v1114_v32 = vld [vmem:[%s1681_s3 + $0x30] sm:$0xff] }
   0xa   :  { %1327 = vmatpush3.bf16.msra.mxu1 %v1326_v9  ;;  %1331 = vmatprep.subr.bf16.mxu0 %v1402_v5  ;;  %v1335_v29 = vpack.c.bf16 %v1113_v25, %v1112_v24  ;;  %v1115_v33 = vld [vmem:[%s1681_s3 + $0x38] sm:$0xff]  ;;  %v1127_v39 = vld [vmem:[%s1679_s1 + $0x10] sm:$0x3f]  ;;  %v1119_v41 = vld [vmem:[%s1683_s5 + $0x20] sm:$0xff] }
   0xb   :  { %1241 = vmatprep.subr.mxu1 %v1400_v2  ;;  %v1338_v37 = vpack.c.bf16 %v1115_v33, %v1114_v32  ;;  %v1126_v40 = vld [vmem:[%s1678_s0 + $0x10] sm:$0xff]  ;;  %v1120_v42 = vld [vmem:[%s1683_s5 + $0x28] sm:$0xff]  ;;  %v1122_v45 = vld [vmem:[%s1683_s5 + $0x38] sm:$0xff] }
   0xc   :  { %v1341_v43 = vpack.c.bf16 %v1120_v42, %v1119_v41  ;;  %v1121_v44 = vld [vmem:[%s1683_s5 + $0x30] sm:$0xff]  ;;  %v1104_v47 = vld [vmem:[%s1684_s6] ss:$0 sm:$0xff]  ;;  %v1117_v52 = vld [vmem:[%s1682_s4 + $0x1] ss:$0 sm:$0xff] }
   0xd   :  { %1333 = vmatpush3.bf16.msra.mxu0 %v1332_v22  ;;  %v1344_v46 = vpack.c.bf16 %v1122_v45, %v1121_v44  ;;  %v1132_v53 = vld [vmem:[%s1681_s3 + $0x40] sm:$0xff]  ;;  %v1133_v54 = vld [vmem:[%s1681_s3 + $0x48] sm:$0xff]  ;;  %v1134_v61 = vld [vmem:[%s1681_s3 + $0x50] sm:$0xff] }
   0xe   :  { %1334 = vmatprep.subr.bf16.mxu0 %v1402_v5  ;;  %v1347_v58 = vpack.c.bf16 %v1133_v54, %v1132_v53  ;;  %v1129_v59 = vld [vmem:[%s1680_s2 + $0x2] ss:$0 sm:$0xff]  ;;  %v1135_v62 = vld [vmem:[%s1681_s3 + $0x58] sm:$0xff]  ;;  %v1140_v9 = vld [vmem:[%s1683_s5 + $0x48] sm:$0xff] }
   0xf   :  { %v1350_v3 = vpack.c.bf16 %v1135_v62, %v1134_v61  ;;  %v1147_v6 = vld [vmem:[%s1679_s1 + $0x18] sm:$0x3f]  ;;  %v1139_v8 = vld [vmem:[%s1683_s5 + $0x40] sm:$0xff]  ;;  %v1141_v11 = vld [vmem:[%s1683_s5 + $0x50] sm:$0xff] }
  0x10   :  { %v1146_v7 = vld [vmem:[%s1678_s0 + $0x18] sm:$0xff]  ;;  %v1353_v10 = vpack.c.bf16 %v1140_v9, %v1139_v8  ;;  %v1152_v20 = vld [vmem:[%s1681_s3 + $0x60] sm:$0xff]  ;;  %v1153_v21 = vld [vmem:[%s1681_s3 + $0x68] sm:$0xff] }
  0x11   :  { %v1142_v12 = vld [vmem:[%s1683_s5 + $0x58] sm:$0xff]  ;;  %v1359_v25 = vpack.c.bf16 %v1153_v21, %v1152_v20 }
  0xd8   :  { %v110_v14 = vpop.f32.mrb[0].mxu0 }
  0xd9   :  { %v111_v15 = vadd.f32 %v1099_v13, %v110_v14  ;;  %v1218_v16 = vpop.f32.mrb[1].mxu0  ;;  %v1356_v13 = vpack.c.bf16 %v1142_v12, %v1141_v11  ;;  %v1124_v14 = vld [vmem:[%s1684_s6 + $0x1] ss:$0 sm:$0xff] }
  0xdb   :  { %v114_v17 = vmax.f32 %v111_v15, 0.0 }
  0xdd   :  { %1228 = vmatmul.mubr.msk.f32.vlgmr.msra.gmra.mrb[0].mxu1 %vm126_vm3, %v114_v17 }
  0xde   :  { %1242 = vmatpush3.msk.msra.mxu1 %vm40_vm0, %v1107_v18  ;;  %1243 = vmatprep.mubr.msk.f32.mxu1 %vm1401_vm1, %v1400_v2 }
  0xdf   :  { %1340 = vmatprep.subr.bf16.mxu1 %v1402_v5 }
  0xe1   :  { %1244 = vmatmul.mubr.msk.f32.vlgmr.msra.gmra.mrb[2].mxu1 %vm36_vm2, %v1106_v19  ;;  %v1137_v19 = vld [vmem:[%s1682_s4 + $0x2] ss:$0 sm:$0xff] }
  0xe2   :  { %1265 = vmatprep.mubr.msk.f32.mxu1 %vm1401_vm1, %v1400_v2  ;;  %1342 = vmatpush3.bf16.msra.mxu1 %v1341_v43 }
  0xe3   :  { %1343 = vmatprep.subr.bf16.mxu1 %v1402_v5 }
  0xe6   :  { %1345 = vmatpush3.bf16.msra.mxu1 %v1344_v46 }
  0xe7   :  { %1346 = vmatprep.subr.bf16.mxu1 %v1402_v5 }
 0x1b0   :  { %v196_v26 = vpop.f32.mrb[0].mxu1 }
 0x1b1   :  { %v197_v27 = vadd.f32 %v1102_v23, %v196_v26  ;;  %v1229_v28 = vpop.f32.mrb[1].mxu1  ;;  %v1149_v26 = vld [vmem:[%s1680_s2 + $0x3] ss:$0 sm:$0xff] }
 0x1b2   :  { %v1154_v28 = vld [vmem:[%s1681_s3 + $0x70] sm:$0xff] }
 0x1b3   :  { %v200_v31 = vmax.f32 %v197_v27, 0.0 }
 0x1b4   :  { %v372_v34 = vpop.f32.mrb[2].mxu1 }
 0x1b5   :  { %1239 = vmatmul.mubr.msk.f32.vlgmr.msra.gmra.mrb[2].mxu0 %vm126_vm3, %v200_v31  ;;  %v373_v35 = vadd.f32 %v1109_v30, %v372_v34  ;;  %v1245_v36 = vpop.f32.mrb[3].mxu1 }
 0x1b6   :  { %1336 = vmatpush3.bf16.msra.mxu0 %v1335_v29  ;;  %1254 = vmatprep.mubr.msk.f32.mxu0 %vm1401_vm1, %v1400_v2  ;;  %v1155_v29 = vld [vmem:[%s1681_s3 + $0x78] sm:$0xff]  ;;  %v1160_v36 = vld [vmem:[%s1683_s5 + $0x68] sm:$0xff] }
 0x1b7   :  { %1337 = vmatprep.subr.bf16.mxu0 %v1402_v5  ;;  %v376_v38 = vmax.f32 %v373_v35, 0.0  ;;  %v1362_v33 = vpack.c.bf16 %v1155_v29, %v1154_v28  ;;  %v1159_v35 = vld [vmem:[%s1683_s5 + $0x60] sm:$0xff] }
 0x1ba   :  { %1339 = vmatpush3.bf16.msra.mxu0 %v1338_v37  ;;  %v1365_v37 = vpack.c.bf16 %v1160_v36, %v1159_v35 }
 0x1bb   :  { %1268 = vmatprep.subr.mxu0 %v1400_v2 }
 0x1bd   :  { %1255 = vmatmul.mubr.msk.f32.vlgmr.msra.gmra.mrb[4].mxu0 %vm126_vm3, %v376_v38  ;;  %v1162_v38 = vld [vmem:[%s1683_s5 + $0x78] sm:$0xff] }
 0x1be   :  { %1269 = vmatpush3.msk.msra.mxu0 %vm40_vm0, %v1127_v39  ;;  %1270 = vmatprep.mubr.msk.f32.mxu0 %vm1401_vm1, %v1400_v2 }
 0x1bf   :  { %1352 = vmatprep.subr.bf16.mxu0 %v1402_v5 }
 0x1c1   :  { %1271 = vmatmul.mubr.msk.f32.vlgmr.msra.gmra.mrb[6].mxu0 %vm36_vm2, %v1126_v40  ;;  %v1144_v40 = vld [vmem:[%s1684_s6 + $0x2] ss:$0 sm:$0xff] }
 0x1c2   :  { %1292 = vmatprep.mubr.msk.f32.mxu0 %vm1401_vm1, %v1400_v2  ;;  %1354 = vmatpush3.bf16.msra.mxu0 %v1353_v10 }
 0x1c3   :  { %1355 = vmatprep.subr.bf16.mxu0 %v1402_v5 }
 0x1c6   :  { %1357 = vmatpush3.bf16.msra.mxu0 %v1356_v13 }
 0x1c7   :  { %1358 = vmatprep.subr.bf16.mxu0 %v1402_v5 }
 0x288   :  { %v281_v48 = vpop.f32.mrb[2].mxu0 }
 0x289   :  { %v282_v49 = vadd.f32 %v1104_v47, %v281_v48  ;;  %v1240_v50 = vpop.f32.mrb[3].mxu0 }
 0x28b   :  { %v285_v51 = vmax.f32 %v282_v49, 0.0  ;;  %v1164_v49 = vld [vmem:[%s1684_s6 + $0x3] ss:$0 sm:$0xff] }
 0x28d   :  { %287 = vst.msk [vmem:[#allocation2] sm:$0xff] %vm286_vm4, %v285_v51 }
 0x290   :  { %v459_v55 = vpop.f32.mrb[4].mxu0 }
 0x291   :  { %v460_v56 = vadd.f32 %v1117_v52, %v459_v55  ;;  %v1256_v57 = vpop.f32.mrb[5].mxu0 }
 0x293   :  { %v463_v60 = vmax.f32 %v460_v56, 0.0 }
 0x294   :  { %v637_v63 = vpop.f32.mrb[6].mxu0 }
 0x295   :  { %1266 = vmatmul.mubr.msk.f32.vlgmr.msra.gmra.mrb[4].mxu1 %vm126_vm3, %v463_v60  ;;  %v638_v0 = vadd.f32 %v1129_v59, %v637_v63  ;;  %v1272_v1 = vpop.f32.mrb[7].mxu0 }
 0x296   :  { %1348 = vmatpush3.bf16.msra.mxu1 %v1347_v58  ;;  %1281 = vmatprep.mubr.msk.f32.mxu1 %vm1401_vm1, %v1400_v2 }
 0x297   :  { %1349 = vmatprep.subr.bf16.mxu1 %v1402_v5  ;;  %v641_v4 = vmax.f32 %v638_v0, 0.0 }
 0x29a   :  { %1351 = vmatpush3.bf16.msra.mxu1 %v1350_v3 }
 0x29b   :  { %1295 = vmatprep.subr.mxu1 %v1400_v2 }
 0x29d   :  { %1282 = vmatmul.mubr.msk.f32.vlgmr.msra.gmra.mrb[6].mxu1 %vm126_vm3, %v641_v4 }
 0x29e   :  { %1296 = vmatpush3.msk.msra.mxu1 %vm40_vm0, %v1147_v6  ;;  %1297 = vmatprep.mubr.msk.f32.mxu1 %vm1401_vm1, %v1400_v2 }
 0x29f   :  { %1364 = vmatprep.subr.bf16.mxu1 %v1402_v5 }
 0x2a1   :  { %1298 = vmatmul.mubr.msk.f32.vlgmr.msra.gmra.mrb[8].mxu1 %vm36_vm2, %v1146_v7 }
 0x2a2   :  { %1319 = vmatprep.mubr.msk.f32.mxu1 %vm1401_vm1, %v1400_v2  ;;  %1366 = vmatpush3.bf16.msra.mxu1 %v1365_v37 }
 0x2a3   :  { %1367 = vmatprep.subr.bf16.mxu1 %v1402_v5 }
 0x368   :  { %v546_v15 = vpop.f32.mrb[4].mxu1 }
 0x369   :  { %v547_v16 = vadd.f32 %v1124_v14, %v546_v15  ;;  %v1267_v17 = vpop.f32.mrb[5].mxu1 }
 0x36b   :  { %v550_v18 = vmax.f32 %v547_v16, 0.0 }
 0x36d   :  { %552 = vst.msk [vmem:[#allocation2 + $0x8] sm:$0xff] %vm286_vm4, %v550_v18 }
 0x370   :  { %v724_v22 = vpop.f32.mrb[6].mxu1 }
 0x371   :  { %v725_v23 = vadd.f32 %v1137_v19, %v724_v22  ;;  %v1283_v24 = vpop.f32.mrb[7].mxu1 }
 0x373   :  { %v728_v27 = vmax.f32 %v725_v23, 0.0 }
 0x374   :  { %v902_v30 = vpop.f32.mrb[8].mxu1 }
 0x375   :  { %1293 = vmatmul.mubr.msk.f32.vlgmr.msra.gmra.mrb[8].mxu0 %vm126_vm3, %v728_v27  ;;  %v903_v31 = vadd.f32 %v1149_v26, %v902_v30  ;;  %v1299_v32 = vpop.f32.mrb[9].mxu1 }
 0x376   :  { %1360 = vmatpush3.bf16.msra.mxu0 %v1359_v25  ;;  %1308 = vmatprep.mubr.msk.f32.mxu0 %vm1401_vm1, %v1400_v2  ;;  %v1161_v2 = vld [vmem:[%s1683_s5 + $0x70] sm:$0xff] }
 0x377   :  { %1361 = vmatprep.subr.bf16.mxu0 %v1402_v5  ;;  %v906_v34 = vmax.f32 %v903_v31, 0.0  ;;  %v1368_v39 = vpack.c.bf16 %v1162_v38, %v1161_v2  ;;  %v1157_v5 = vld [vmem:[%s1682_s4 + $0x3] ss:$0 sm:$0xff]  ;;  %s1376_s4 = scalar_lea.vmem %s1089_s30, 512 }
 0x378   :  { %p1377_p0 = scmp.ne.s32.totalorder %s1089_s30, %s1376_s4  ;;  %p1382_p2 = scmp.lt.s32.totalorder %s1376_s4, %s1376_s4 }
 0x379   :  { %1369 = vmatpush3.bf16.msra.mxu1 %v1368_v39 }
 0x37a   :  { %1363 = vmatpush3.bf16.msra.mxu0 %v1362_v33  ;;  %p1383_p3 = por %p1382_p2, %p1381_p1 }
 0x37c   :  { %p1384_p4 = pnand %p1383_p3, %p1377_p0 }
 0x37d   :  { %1309 = vmatmul.mubr.msk.f32.vlgmr.msra.gmra.mrb[10].mxu0 %vm126_vm3, %v906_v34 }
 0x448   :  { %v811_v41 = vpop.f32.mrb[8].mxu0 }
 0x449   :  { %v812_v42 = vadd.f32 %v1144_v40, %v811_v41  ;;  %v1294_v43 = vpop.f32.mrb[9].mxu0 }
 0x44b   :  { %v815_v44 = vmax.f32 %v812_v42, 0.0 }
 0x44d   :  { %817 = vst.msk [vmem:[#allocation2 + $0x10] sm:$0xff] %vm286_vm4, %v815_v44 }
 0x450   :  { %v989_v45 = vpop.f32.mrb[10].mxu0 }
 0x451   :  { %v990_v46 = vadd.f32 %v1157_v5, %v989_v45  ;;  %v1310_v47 = vpop.f32.mrb[11].mxu0 }
 0x453   :  { %v993_v48 = vmax.f32 %v990_v46, 0.0 }
 0x455   :  { %1320 = vmatmul.mubr.msk.f32.vlgmr.msra.gmra.mrb[10].mxu1 %vm126_vm3, %v993_v48 }
 0x528   :  { %v1076_v50 = vpop.f32.mrb[10].mxu1 }
 0x529   :  { %v1077_v51 = vadd.f32 %v1164_v49, %v1076_v50  ;;  %v1321_v52 = vpop.f32.mrb[11].mxu1 }
 0x52b   :  { %v1080_v53 = vmax.f32 %v1077_v51, 0.0 }
 0x52d   :  { %1082 = vst.msk [vmem:[#allocation2 + $0x18] sm:$0xff] %vm286_vm4, %v1080_v53 }
 0x52e   :  { %1387 = shalt.err (!%p1384_p4)
}
 0x52f   :  { %s1388_s6 = scalar_lea.hbm %s1685_s7, 512 }
 0x530   :  { %p1389_p5 = scmp.ne.s32.totalorder %s1685_s7, %s1388_s6  ;;  %p1392_p6 = scmp.lt.u32.totalorder %s1388_s6, %s1685_s7 }
 0x532   :  { %p1394_p7 = pnand %p1392_p6, %p1389_p5 }
 0x534   :  { %1397 = shalt.err (!%p1394_p7)
}
 0x535   :  { %s1404_s14 = smov 128   ;;  %s1405_s15 = smov 8  }
 0x536   :  { %1094 = dma.vmem_to_hbm [thread:$0]  %s1089_s30, 512, %s1685_s7, [#allocation3], %s1404_s14, %s1404_s14, %s1405_s15  }
 0x537   :  { %1398 = dma.done.wait [#allocation3], 512  }
 0x538   :  { %1399 = vsyncadd [#allocation3], 4294966784 }
 0x539   :  { %1098 = vsyncpa [#allocation3], 1 }

</bundles_post_ra>
